<compile_context>
chip_gen: v7x
topology: tpu7x:2x2x1
jax: 0.10.0
libtpu: 0.0.40
codegen_flags: <defaults>
</compile_context>

<pallas_src>
import math

import jax
import jax.numpy as jnp
from jax import lax
from jax.experimental import pallas as pl
from jax.experimental.pallas import tpu as pltpu

GAMMA = 2.0
EPS = 1e-7
TH = 0.5


# ----------------------------------------------------------------------------- reference
def _reference(x, target, *, gamma=GAMMA, eps=EPS, th=TH):
    """Pure-JAX ReducedFocalLoss forward (also the small-C XLA fallback)."""
    p = jax.nn.softmax(x.astype(jnp.float32), axis=1)
    p = jnp.clip(p, eps, 1.0 - eps)
    pt = jnp.take_along_axis(p, target.astype(jnp.int32)[:, None], axis=1)[:, 0]
    loss = -jnp.log(pt)
    factor = ((1.0 - pt) ** gamma) / (th ** gamma)
    factor = jnp.where(pt > th, factor, jnp.ones_like(factor))
    return loss * factor


# ----------------------------------------------------------------------------- kernel
def _make_kernel(gamma, eps, th):
    gamma = float(gamma)
    inv_th_gamma = 1.0 / (th ** gamma)
    # clamp(softmax, eps, 1-eps) at the target class is equivalent to clamping
    # the NLL loss to [-log(1-eps), -log(eps)]; pt is recovered as exp(-loss).
    loss_lo = -math.log(1.0 - eps)
    loss_hi = -math.log(eps)

    def kernel(x_ref, t_ref, o_ref):
        x_raw = x_ref[...]                              # (TN, C) logits, wire dtype
        t = t_ref[...]                                  # (TN, 1) int32 target class
        x = x_raw.astype(jnp.float32)                   # upcast in VMEM only

        # numerically-stable log-sum-exp pieces; the full softmax is never built
        m = jnp.max(x, axis=1, keepdims=True)           # (TN, 1)
        e = jnp.exp(x - m)                              # (TN, C) sole C-wide EUP op
        denom = jnp.sum(e, axis=1, keepdims=True)       # (TN, 1)

        # gather the *logit* at the target class: one-hot select on the narrow
        # wire dtype + lane reduce (exact: a single non-zero per row).
        col = lax.broadcasted_iota(jnp.int32, x_raw.shape, 1)       # (TN, C)
        onehot = col == t                                           # (TN, C)
        x_t = jnp.sum(jnp.where(onehot, x_raw, jnp.zeros_like(x_raw)),
                      axis=1, keepdims=True).astype(jnp.float32)    # (TN, 1)

        # everything below operates on the (TN, 1) per-row column only
        loss = jnp.clip((m - x_t) + jnp.log(denom), loss_lo, loss_hi)  # -log(clamped p_t)
        pt = jnp.exp(-loss)                                            # clamped softmax @ target
        omp = 1.0 - pt
        if gamma == 2.0:
            powed = omp * omp
        elif gamma == 1.0:
            powed = omp
        else:
            powed = jnp.power(omp, gamma)               # generic (1 - pt) ** gamma
        factor = powed * inv_th_gamma
        factor = jnp.where(pt > th, factor, jnp.ones_like(factor))
        o_ref[...] = loss * factor

    return kernel


# ----------------------------------------------------------------------------- tiling
def _vmem_profile():
    """Generation-aware tile target / VMEM limit (tile size is the main lever)."""
    try:
        vmem_phys = int(pltpu.get_tpu_info().vmem_capacity_bytes)
    except Exception:
        vmem_phys = None
    if vmem_phys is None:
        # Unknown chip: conservative defaults, leave the scoped-VMEM limit alone.
        return {"vmem_limit": None, "target_tile": 2 << 20, "budget": 24 << 20, "min_steps": 2}
    if vmem_phys >= 100 * (1 << 20):
        # v5e / v6e class: 128 MiB physical VMEM, single TensorCore -> big tiles.
        return {"vmem_limit": 64 << 20, "target_tile": 6 << 20, "budget": 48 << 20, "min_steps": 2}
    # v7x class: 64 MiB physical VMEM, 2 TensorCores -> modest tiles and >=4 grid
    # steps so the "parallel" batch axis shards across both cores.
    return {"vmem_limit": 48 << 20, "target_tile": 3 << 20, "budget": 36 << 20, "min_steps": 4}


def _choose_tile_rows(n, c, itemsize, prof):
    """Pick TN (multiple of 16) respecting the VMEM budget and grid-step floor."""
    # Per-row live-VMEM footprint (bytes):
    #   2 * c * itemsize   double-buffered input x tile
    #   4 * c * 4          f32 tile-wide intermediates (x upcast, exp, broadcasts)
    #   2 * 2 * 128 * 4    lane-padded (tn,128) buffers for the target + output
    per_row = 2 * c * itemsize + 4 * c * 4 + 2 * 2 * 128 * 4
    tn_budget = max(16, prof["budget"] // per_row)
    tn_target = max(16, prof["target_tile"] // max(1, c * itemsize))
    tn = min(tn_budget, tn_target)
    tn = max(16, (tn // 16) * 16)

    n_pad16 = ((n + 15) // 16) * 16
    if prof["min_steps"] > 1:
        cap = max(16, (n_pad16 // prof["min_steps"] // 16) * 16)
        tn = min(tn, cap)
    tn = min(tn, n_pad16, 4096)
    return tn


# ----------------------------------------------------------------------------- wrapper
def reduced_focal_loss(x, target, *, gamma=GAMMA, eps=EPS, th=TH,
                       min_kernel_classes=64, force_kernel=False):
    """x: (N, C) float logits (f32 or bf16), target: (N,) int. Returns (N,) f32."""
    n, c = x.shape

    # Small-C regime: only C of 128 vreg lanes would carry data -> plain XLA
    # is at least as good (perf-review item).
    if c < min_kernel_classes and not force_kernel:
        return _reference(x, target, gamma=gamma, eps=eps, th=th)

    prof = _vmem_profile()
    tn = _choose_tile_rows(n, c, x.dtype.itemsize, prof)
    n_pad = pl.cdiv(n, tn) * tn

    if n_pad != n:
        # pad rows with zeros (target 0); padded outputs are sliced off below
        x = jnp.pad(x, ((0, n_pad - n), (0, 0)))
        target = jnp.pad(target, ((0, n_pad - n),))
    t2d = target.astype(jnp.int32).reshape(n_pad, 1)

    cost = pl.CostEstimate(
        flops=8 * n_pad * c,
        transcendentals=n_pad * c + 3 * n_pad,
        bytes_accessed=n_pad * c * x.dtype.itemsize + 2 * n_pad * 4,
    )

    out = pl.pallas_call(
        _make_kernel(gamma, eps, th),
        out_shape=jax.ShapeDtypeStruct((n_pad, 1), jnp.float32),
        grid_spec=pltpu.PrefetchScalarGridSpec(
            num_scalar_prefetch=0,
            grid=(n_pad // tn,),
            in_specs=[
                pl.BlockSpec((tn, c), lambda i: (i, 0)),
                pl.BlockSpec((tn, 1), lambda i: (i, 0)),
            ],
            out_specs=pl.BlockSpec((tn, 1), lambda i: (i, 0)),
        ),
        compiler_params=pltpu.CompilerParams(
            dimension_semantics=("parallel",),
            vmem_limit_bytes=prof["vmem_limit"],
        ),
        cost_estimate=cost,
    )(x, t2d)
    return out[:n, 0]


# ----------------------------------------------------------------------------- test
if __name__ == "__main__":
    key = jax.random.PRNGKey(0)
    k1, k2, k3, k4, k5, k6 = jax.random.split(key, 6)

    # Case 1: main kernel path (C >= 64 -> Pallas), lane/sublane-friendly shape.
    N, C = 128, 128
    x = jax.random.normal(k1, (N, C), jnp.float32) * 3.0
    t = jax.random.randint(k2, (N,), 0, C, dtype=jnp.int32)
    out = reduced_focal_loss(x, t)
    jax.block_until_ready(out)
    ref = _reference(x, t)
    assert out.shape == (N,)
    assert jnp.allclose(out, ref, rtol=1e-5, atol=1e-5), (out, ref)

    # Case 2: ragged batch + non-128 class count through the kernel (padding path).
    N2, C2 = 50, 96
    x2 = jax.random.normal(k3, (N2, C2), jnp.float32) * 2.0
    t2 = jax.random.randint(k4, (N2,), 0, C2, dtype=jnp.int32)
    out2 = reduced_focal_loss(x2, t2, force_kernel=True)
    jax.block_until_ready(out2)
    ref2 = _reference(x2, t2)
    assert out2.shape == (N2,)
    assert jnp.allclose(out2, ref2, rtol=1e-5, atol=1e-5), (out2, ref2)

    # Case 3: bf16 logits stay bf16 on the wire (upcast happens inside VMEM).
    N3, C3 = 64, 256
    x3 = (jax.random.normal(k5, (N3, C3), jnp.float32) * 2.5).astype(jnp.bfloat16)
    t3 = jax.random.randint(k6, (N3,), 0, C3, dtype=jnp.int32)
    out3 = reduced_focal_loss(x3, t3)
    jax.block_until_ready(out3)
    ref3 = _reference(x3, t3)
    assert out3.shape == (N3,)
    assert jnp.allclose(out3, ref3, rtol=1e-4, atol=1e-4), (out3, ref3)

    # Case 4: tiny class count -> XLA fallback path (kernel layout would waste lanes).
    N4, C4 = 13, 24
    x4 = jax.random.normal(jax.random.PRNGKey(1), (N4, C4), jnp.float32)
    t4 = jax.random.randint(jax.random.PRNGKey(2), (N4,), 0, C4, dtype=jnp.int32)
    out4 = reduced_focal_loss(x4, t4)
    jax.block_until_ready(out4)
    assert out4.shape == (N4,)

    print("KERNEL_OK")
</pallas_src>

<mosaic_0001>
module attributes {stable_mosaic.version = 11 : i64} {
  func.func @kernel(%arg0: i32, %arg1: memref<64x128xf32, #tpu.memory_space<vmem>>, %arg2: memref<64x1xi32, #tpu.memory_space<vmem>>, %arg3: memref<64x1xf32, #tpu.memory_space<vmem>>) attributes {dimension_semantics = [#tpu.dimension_semantics<parallel>], iteration_bounds = array<i64: 2>, scalar_prefetch = 0 : i64, scratch_operands = 0 : i64, tpu.core_type = #tpu.core_type<tc>, window_params = [{transform_indices = @transform_0, window_bounds = array<i64: 64, 128>}, {transform_indices = @transform_1, window_bounds = array<i64: 64, 1>}, {transform_indices = @transform_2, window_bounds = array<i64: 64, 1>}]} {
    %c0 = arith.constant 0 : index
    %c0_0 = arith.constant 0 : index
    %0 = vector.load %arg1[%c0, %c0_0] : memref<64x128xf32, #tpu.memory_space<vmem>>, vector<64x128xf32>
    %c0_1 = arith.constant 0 : index
    %c0_2 = arith.constant 0 : index
    %1 = vector.load %arg2[%c0_1, %c0_2] : memref<64x1xi32, #tpu.memory_space<vmem>>, vector<64x1xi32>
    %cst = arith.constant dense<0xFF800000> : vector<64xf32>
    %2 = vector.multi_reduction <maximumf>, %0, %cst [1] : vector<64x128xf32> to vector<64xf32>
    %3 = vector.shape_cast %2 : vector<64xf32> to vector<64x1xf32>
    %4 = vector.broadcast %3 : vector<64x1xf32> to vector<64x128xf32>
    %5 = arith.subf %0, %4 : vector<64x128xf32>
    %6 = math.exp %5 : vector<64x128xf32>
    %cst_3 = arith.constant dense<0.000000e+00> : vector<64xf32>
    %7 = vector.multi_reduction <add>, %6, %cst_3 [1] : vector<64x128xf32> to vector<64xf32>
    %8 = vector.shape_cast %7 : vector<64xf32> to vector<64x1xf32>
    %9 = tpu.iota {dimensions = array<i32: 1>} : vector<64x128xi32>
    %10 = vector.broadcast %1 : vector<64x1xi32> to vector<64x128xi32>
    %11 = arith.cmpi eq, %9, %10 : vector<64x128xi32>
    %cst_4 = arith.constant 0.000000e+00 : f32
    %12 = vector.broadcast %cst_4 : f32 to vector<64x128xf32>
    %13 = arith.select %11, %0, %12 : vector<64x128xi1>, vector<64x128xf32>
    %cst_5 = arith.constant dense<0.000000e+00> : vector<64xf32>
    %14 = vector.multi_reduction <add>, %13, %cst_5 [1] : vector<64x128xf32> to vector<64xf32>
    %15 = vector.shape_cast %14 : vector<64xf32> to vector<64x1xf32>
    %16 = arith.subf %3, %15 : vector<64x1xf32>
    %17 = math.log %8 : vector<64x1xf32>
    %18 = arith.addf %16, %17 : vector<64x1xf32>
    %cst_6 = arith.constant 1.00000008E-7 : f32
    %cst_7 = arith.constant 16.1180954 : f32
    %19 = vector.broadcast %cst_6 : f32 to vector<64x1xf32>
    %20 = arith.maximumf %19, %18 : vector<64x1xf32>
    %21 = vector.broadcast %cst_7 : f32 to vector<64x1xf32>
    %22 = arith.minimumf %21, %20 : vector<64x1xf32>
    %cst_8 = arith.constant 0.000000e+00 : f32
    %23 = vector.broadcast %cst_8 : f32 to vector<64x1xf32>
    %24 = arith.subf %23, %22 : vector<64x1xf32>
    %25 = math.exp %24 : vector<64x1xf32>
    %cst_9 = arith.constant 1.000000e+00 : f32
    %26 = vector.broadcast %cst_9 : f32 to vector<64x1xf32>
    %27 = arith.subf %26, %25 : vector<64x1xf32>
    %28 = arith.mulf %27, %27 : vector<64x1xf32>
    %cst_10 = arith.constant 4.000000e+00 : f32
    %29 = vector.broadcast %cst_10 : f32 to vector<64x1xf32>
    %30 = arith.mulf %28, %29 : vector<64x1xf32>
    %cst_11 = arith.constant 5.000000e-01 : f32
    %31 = vector.broadcast %cst_11 : f32 to vector<64x1xf32>
    %32 = arith.cmpf ogt, %25, %31 : vector<64x1xf32>
    %cst_12 = arith.constant 1.000000e+00 : f32
    %33 = vector.broadcast %cst_12 : f32 to vector<64x1xf32>
    %34 = arith.select %32, %30, %33 : vector<64x1xi1>, vector<64x1xf32>
    %35 = arith.mulf %22, %34 : vector<64x1xf32>
    %c0_13 = arith.constant 0 : index
    %c0_14 = arith.constant 0 : index
    %36 = vector.load %arg3[%c0_13, %c0_14] : memref<64x1xf32, #tpu.memory_space<vmem>>, vector<64x1xf32>
    tpu.vector_store %arg3[%c0_13, %c0_14], %35 {strides = array<i32>} : memref<64x1xf32, #tpu.memory_space<vmem>>, vector<64x1xf32>,
    return
  }
  func.func @transform_0(%arg0: i32) -> (i32, i32) {
    %c0_i32 = arith.constant 0 : i32
    %c0_i32_0 = arith.constant 0 : i32
    return %arg0, %c0_i32 : i32, i32
  }
  func.func @transform_1(%arg0: i32) -> (i32, i32) {
    %c0_i32 = arith.constant 0 : i32
    %c0_i32_0 = arith.constant 0 : i32
    return %arg0, %c0_i32 : i32, i32
  }
  func.func @transform_2(%arg0: i32) -> (i32, i32) {
    %c0_i32 = arith.constant 0 : i32
    %c0_i32_0 = arith.constant 0 : i32
    return %arg0, %c0_i32 : i32, i32
  }
}

</mosaic_0001>

<bundles_post_ra>
// kernel: tpu_custom_call.1
= control target key start
LH: loop header
LB: loop body
LE: loop exit
PB: predicated region body
PF: predicated region fallthrough
CT: control target
= control target key end

     0   :  { %s592_s9 = smov 0   ;;  %s744_s0 = inlined_call_operand.vmem [shape: f32[128,128], index: 0, kind: input, shape index: {}]   ;;  %s745_s1 = inlined_call_operand.vmem [shape: s32[128,1], index: 1, kind: input, shape index: {}]   ;;  %s746_s2 = inlined_call_operand.vmem [shape: f32[128,1], index: 2, kind: output, shape index: {}]  }
   0x1 LB: > { %s496_s10 = sadd.s32 4294967295, %s574_s9   ;;  %p500_p0 = scmp.ge.s32.totalorder %s574_s9, 1  ;;  %s574_s9 = sphi %s592_s9, %s12_s9  }
   0x2   : > { %p124_p1 = scmp.lt.s32.totalorder %s574_s9, 3 }
   0x4   : > { %p125_p2 = pnand %p500_p0, %p124_p1 }
   0x5   : > { %s501_s11 = sshll.u32 (!%p125_p2), %s496_s10, 3  ;;  %v576_v0 = vmov (!%p125_p2), 0   ;;  %v241_v26 = vlaneseq (!%p125_p2)  ;;  %vm419_vm9 = vcmask (!%p125_p2), 7168  }
   0x6   : > { %128 = sbr.rel (%p125_p2) target bundleno = 385 (0x181), region = 28  ;;  %p152_p3 = scmp.lt.s32.totalorder (!%p125_p2), %s501_s11, 15  ;;  %519 = vset.pattern.permute.xlu1 (!%p125_p2), %v576_v0  ;;  %518 = vset.pattern.permute.xlu0 (!%p125_p2), %v576_v0 }
   0x7   : > { %v654_v33 = vand.u32 (!%p125_p2), 127, %v241_v26 }
   0xd   : > { %s748_s11 = smov (!%p152_p3, %s501_s11), 15 }
   0xe   : > { %s600_s12 = sshll.u32 %s748_s11, 3 }
   0xf   : > { %s155_s15 = scalar_lea.vmem %s744_s0, %s600_s12  ;;  %s161_s18 = scalar_lea.vmem %s745_s1, %s600_s12 }
  0x10   : > { %v606_v1 = vld [vmem:[%s155_s15 + $0x10] sm:$0xff]  ;;  %v608_v2 = vld [vmem:[%s155_s15] sm:$0xff]  ;;  %v612_v3 = vld [vmem:[%s155_s15 + $0x18] sm:$0xff]  ;;  %s715_s21 = scalar_lea.vmem %s746_s2, %s600_s12 }
  0x11   : > { %189 = vmax.xlane.f32.xlu1 %v606_v1  ;;  %185 = vmax.xlane.f32.xlu0 %v608_v2  ;;  %v170_v4 = vld [vmem:[%s155_s15 + $0x8] sm:$0xff]  ;;  %v617_v6 = vld [vmem:[%s155_s15 + $0x20] sm:$0xff]  ;;  %v621_v7 = vld [vmem:[%s155_s15 + $0x38] sm:$0xff] }
  0x12   : > { %v615_v5 = vld [vmem:[%s155_s15 + $0x28] sm:$0xff]  ;;  %v623_v8 = vld [vmem:[%s155_s15 + $0x30] sm:$0xff]  ;;  %v177_v11 = vld [vmem:[%s161_s18] sm:$0xff] }
  0x13   : > { %v178_v9 = vld [vmem:[%s161_s18 + $0x8] sm:$0xff]  ;;  %v179_v10 = vld [vmem:[%s161_s18 + $0x10] sm:$0xff]  ;;  %v180_v12 = vld [vmem:[%s161_s18 + $0x18] sm:$0xff] }
  0x14   : > { %v181_v13 = vld [vmem:[%s161_s18 + $0x20] sm:$0xff]  ;;  %v182_v14 = vld [vmem:[%s161_s18 + $0x28] sm:$0xff]  ;;  %v183_v15 = vld [vmem:[%s161_s18 + $0x30] sm:$0xff] }
  0x15   : > { %191 = vmax.xlane.f32.xlu1 %v612_v3  ;;  %187 = vmax.xlane.f32.xlu0 %v170_v4  ;;  %v184_v16 = vld [vmem:[%s161_s18 + $0x38] sm:$0xff] }
  0x19   : > { %195 = vmax.xlane.f32.xlu1 %v615_v5  ;;  %193 = vmax.xlane.f32.xlu0 %v617_v6 }
  0x1d   : > { %199 = vmax.xlane.f32.xlu1 %v621_v7  ;;  %197 = vmax.xlane.f32.xlu0 %v623_v8 }
  0x2e   : > { %247 = vperm.xlu1 %519, %v178_v9  }
  0x32   : > { %250 = vperm.xlu1 %519, %v179_v10  }
  0x33   : > { %244 = vperm.xlu0 %518, %v177_v11  }
  0x36   : > { %253 = vperm.xlu1 %519, %v180_v12  }
  0x3a   : > { %256 = vperm.xlu1 %519, %v181_v13  }
  0x3e   : > { %259 = vperm.xlu1 %519, %v182_v14  }
  0x42   : > { %262 = vperm.xlu1 %519, %v183_v15  }
  0x46   : > { %265 = vperm.xlu1 %519, %v184_v16  }
  0x9e   : > { %v631_v17 = vpop.xlane.xlu1 %189  ;;  %v633_v18 = vpop.xlane.xlu0 %185 }
  0x9f   : > { %v201_v19 = vsub.f32 %v608_v2, %v633_v18  ;;  %v203_v28 = vsub.f32 %v606_v1, %v631_v17 }
  0xa1   : > { %v209_v23 = vmul.f32 1.442695, %v201_v19  ;;  %v213_v34 = vmul.f32 1.442695, %v203_v28 }
  0xa2   : > { %v637_v20 = vpop.xlane.xlu1 %191  ;;  %v639_v21 = vpop.xlane.xlu0 %187 }
  0xa3   : > { %v204_v22 = vsub.f32 %v612_v3, %v637_v20  ;;  %v202_v24 = vsub.f32 %v170_v4, %v639_v21  ;;  %520 = vpow2.f32 %v209_v23 }
  0xa5   : > { %v215_v29 = vmul.f32 1.442695, %v204_v22  ;;  %v211_v30 = vmul.f32 1.442695, %v202_v24 }
  0xa6   : > { %v644_v25 = vpop.xlane.xlu1 %195  ;;  %v646_v27 = vpop.xlane.xlu0 %193 }
  0xa7   : > { %v206_v31 = vsub.f32 %v615_v5, %v644_v25  ;;  %522 = vpow2.f32 %v215_v29  ;;  %v205_v35 = vsub.f32 %v617_v6, %v646_v27 }
  0xa8   : > { %524 = vpow2.f32 %v211_v30 }
  0xa9   : > { %v219_v36 = vmul.f32 1.442695, %v206_v31  ;;  %526 = vpow2.f32 %v213_v34  ;;  %v217_v41 = vmul.f32 1.442695, %v205_v35 }
  0xaa   : > { %v652_v32 = vpop.xlane.xlu1 %199  ;;  %v660_v38 = vpop.xlane.xlu0 %197 }
  0xab   : > { %v208_v37 = vsub.f32 %v621_v7, %v652_v32  ;;  %528 = vpow2.f32 %v219_v36  ;;  %v207_v43 = vsub.f32 %v623_v8, %v660_v38 }
  0xac   : > { %530 = vpow2.f32 %v217_v41 }
  0xad   : > { %v223_v42 = vmul.f32 1.442695, %v208_v37  ;;  %v521_v46 = vpop.eup %520  ;;  %v221_v48 = vmul.f32 1.442695, %v207_v43 }
  0xae   : > { %v248_v39 = vpop.permute.xlu1 %247 }
  0xaf   : > { %vm268_vm0 = vcmp.eq.s32.totalorder %v654_v33, %v248_v39  ;;  %532 = vpow2.f32 %v223_v42 }
  0xb0   : > { %v276_v40 = vsel %vm268_vm0, %v170_v4, 0.0  ;;  %534 = vpow2.f32 %v221_v48 }
  0xb1   : > { %285 = vadd.xlane.f32.xlu1 %v276_v40  ;;  %v523_v50 = vpop.eup %522 }
  0xb2   : > { %v251_v44 = vpop.permute.xlu1 %250  ;;  %v245_v45 = vpop.permute.xlu0 %244 }
  0xb3   : > { %vm267_vm1 = vcmp.eq.s32.totalorder %v654_v33, %v245_v45  ;;  %v525_v51 = vpop.eup %524  ;;  %vm269_vm3 = vcmp.eq.s32.totalorder %v654_v33, %v251_v44 }
  0xb4   : > { %v275_v47 = vsel %vm267_vm1, %v608_v2, 0.0  ;;  %v527_v53 = vpop.eup %526  ;;  %v277_v63 = vsel %vm269_vm3, %v606_v1, 0.0 }
  0xb5   : > { %225 = vadd.xlane.f32.xlu1 %v521_v46  ;;  %283 = vadd.xlane.f32.xlu0 %v275_v47  ;;  %v529_v54 = vpop.eup %528 }
  0xb6   : > { %v254_v49 = vpop.permute.xlu1 %253  ;;  %v531_v56 = vpop.eup %530 }
  0xb7   : > { %vm270_vm2 = vcmp.eq.s32.totalorder %v654_v33, %v254_v49 }
  0xb8   : > { %v278_v60 = vsel %vm270_vm2, %v612_v3, 0.0 }
  0xb9   : > { %231 = vadd.xlane.f32.xlu1 %v523_v50  ;;  %227 = vadd.xlane.f32.xlu0 %v525_v51  ;;  %v533_v57 = vpop.eup %532 }
  0xba   : > { %v257_v52 = vpop.permute.xlu1 %256  ;;  %v535_v59 = vpop.eup %534 }
  0xbb   : > { %vm271_vm5 = vcmp.eq.s32.totalorder %v654_v33, %v257_v52 }
  0xbc   : > { %v279_v2 = vsel %vm271_vm5, %v617_v6, 0.0 }
  0xbd   : > { %235 = vadd.xlane.f32.xlu1 %v529_v54  ;;  %229 = vadd.xlane.f32.xlu0 %v527_v53 }
  0xbe   : > { %v260_v55 = vpop.permute.xlu1 %259 }
  0xbf   : > { %vm272_vm4 = vcmp.eq.s32.totalorder %v654_v33, %v260_v55 }
  0xc0   : > { %v280_v62 = vsel %vm272_vm4, %v615_v5, 0.0 }
  0xc1   : > { %239 = vadd.xlane.f32.xlu1 %v533_v57  ;;  %233 = vadd.xlane.f32.xlu0 %v531_v56 }
  0xc2   : > { %v263_v58 = vpop.permute.xlu1 %262 }
  0xc3   : > { %vm273_vm7 = vcmp.eq.s32.totalorder %v654_v33, %v263_v58 }
  0xc4   : > { %v281_v3 = vsel %vm273_vm7, %v623_v8, 0.0 }
  0xc5   : > { %289 = vadd.xlane.f32.xlu1 %v278_v60  ;;  %237 = vadd.xlane.f32.xlu0 %v535_v59 }
  0xc6   : > { %v266_v61 = vpop.permute.xlu1 %265 }
  0xc7   : > { %vm274_vm6 = vcmp.eq.s32.totalorder %v654_v33, %v266_v61 }
  0xc8   : > { %v282_v0 = vsel %vm274_vm6, %v621_v7, 0.0 }
  0xc9   : > { %293 = vadd.xlane.f32.xlu1 %v280_v62  ;;  %287 = vadd.xlane.f32.xlu0 %v277_v63 }
  0xcd   : > { %297 = vadd.xlane.f32.xlu1 %v282_v0  ;;  %291 = vadd.xlane.f32.xlu0 %v279_v2 }
  0xd1   : > { %295 = vadd.xlane.f32.xlu0 %v281_v3 }
 0x13e   : > { %v286_v4 = vpop.xlane.xlu1 %285 }
 0x13f   : > { %v300_v28 = vsub.f32 %v639_v21, %v286_v4 }
 0x142   : > { %v226_v5 = vpop.xlane.xlu1 %225  ;;  %v284_v1 = vpop.xlane.xlu0 %283 }
 0x143   : > { %536 = vlog2.f32 %v226_v5  ;;  %v299_v13 = vsub.f32 %v633_v18, %v284_v1 }
 0x146   : > { %v232_v9 = vpop.xlane.xlu1 %231  ;;  %v228_v10 = vpop.xlane.xlu0 %227 }
 0x147   : > { %538 = vlog2.f32 %v232_v9 }
 0x148   : > { %540 = vlog2.f32 %v228_v10 }
 0x14a   : > { %v236_v11 = vpop.xlane.xlu1 %235  ;;  %v230_v12 = vpop.xlane.xlu0 %229 }
 0x14b   : > { %542 = vlog2.f32 %v236_v11 }
 0x14c   : > { %544 = vlog2.f32 %v230_v12 }
 0x14d   : > { %v537_v6 = vpop.eup %536 }
 0x14e   : > { %v308_v7 = vmul.f32 0.6931472, %v537_v6  ;;  %v240_v14 = vpop.xlane.xlu1 %239  ;;  %v234_v15 = vpop.xlane.xlu0 %233 }
 0x14f   : > { %546 = vlog2.f32 %v240_v14 }
 0x150   : > { %v323_v8 = vadd.f32 %v308_v7, %v299_v13  ;;  %548 = vlog2.f32 %v234_v15 }
 0x151   : > { %v539_v16 = vpop.eup %538 }
 0x152   : > { %v541_v19 = vpop.eup %540  ;;  %v331_v22 = vmax.f32 %v323_v8, 1.0000001e-07  ;;  %v314_v23 = vmul.f32 0.6931472, %v539_v16  ;;  %v290_v24 = vpop.xlane.xlu1 %289 }
 0x153   : > { %v238_v26 = vpop.xlane.xlu0 %237  ;;  %v310_v29 = vmul.f32 0.6931472, %v541_v19  ;;  %v302_v30 = vsub.f32 %v637_v20, %v290_v24 }
 0x154   : > { %550 = vlog2.f32 %v238_v26  ;;  %v682_v31 = vmin.f32 %v331_v22, 16.118095 }
 0x155   : > { %v543_v18 = vpop.eup %542  ;;  %v324_v33 = vadd.f32 %v310_v29, %v300_v28  ;;  %v326_v34 = vadd.f32 %v314_v23, %v302_v30 }
 0x156   : > { %v545_v35 = vpop.eup %544  ;;  %v347_v36 = vsub.f32 0.0, %v682_v31  ;;  %v318_v37 = vmul.f32 0.6931472, %v543_v18  ;;  %v294_v39 = vpop.xlane.xlu1 %293 }
 0x157   : > { %v288_v40 = vpop.xlane.xlu0 %287  ;;  %v332_v41 = vmax.f32 %v324_v33, 1.0000001e-07  ;;  %v312_v42 = vmul.f32 0.6931472, %v545_v35  ;;  %v334_v43 = vmax.f32 %v326_v34, 1.0000001e-07  ;;  %v304_v21 = vsub.f32 %v644_v25, %v294_v39 }
 0x158   : > { %v355_v44 = vmul.f32 1.442695, %v347_v36  ;;  %v301_v20 = vsub.f32 %v631_v17, %v288_v40 }
 0x159   : > { %v547_v45 = vpop.eup %546  ;;  %v687_v46 = vmin.f32 %v332_v41, 16.118095  ;;  %v689_v47 = vmin.f32 %v334_v43, 16.118095  ;;  %v328_v48 = vadd.f32 %v318_v37, %v304_v21 }
 0x15a   : > { %v549_v49 = vpop.eup %548  ;;  %552 = vpow2.f32 %v355_v44  ;;  %v322_v50 = vmul.f32 0.6931472, %v547_v45  ;;  %v325_v51 = vadd.f32 %v312_v42, %v301_v20  ;;  %v298_v52 = vpop.xlane.xlu1 %297 }
 0x15b   : > { %v292_v53 = vpop.xlane.xlu0 %291  ;;  %v348_v54 = vsub.f32 0.0, %v687_v46  ;;  %v316_v55 = vmul.f32 0.6931472, %v549_v49  ;;  %v350_v25 = vsub.f32 0.0, %v689_v47  ;;  %v336_v56 = vmax.f32 %v328_v48, 1.0000001e-07 }
 0x15c   : > { %v333_v57 = vmax.f32 %v325_v51, 1.0000001e-07  ;;  %v306_v17 = vsub.f32 %v652_v32, %v298_v52  ;;  %v303_v58 = vsub.f32 %v646_v27, %v292_v53 }
 0x15d   : > { %v357_v60 = vmul.f32 1.442695, %v348_v54  ;;  %v361_v61 = vmul.f32 1.442695, %v350_v25  ;;  %v695_v62 = vmin.f32 %v336_v56, 16.118095 }
 0x15e   : > { %v551_v59 = vpop.eup %550  ;;  %v697_v0 = vmin.f32 %v333_v57, 16.118095  ;;  %v330_v2 = vadd.f32 %v322_v50, %v306_v17  ;;  %v327_v3 = vadd.f32 %v316_v55, %v303_v58 }
 0x15f   : > { %v320_v63 = vmul.f32 0.6931472, %v551_v59  ;;  %v296_v4 = vpop.xlane.xlu0 %295  ;;  %554 = vpow2.f32 %v357_v60  ;;  %v352_v5 = vsub.f32 0.0, %v695_v62 }
 0x160   : > { %v305_v1 = vsub.f32 %v660_v38, %v296_v4  ;;  %556 = vpow2.f32 %v361_v61  ;;  %v349_v32 = vsub.f32 0.0, %v697_v0  ;;  %v338_v27 = vmax.f32 %v330_v2, 1.0000001e-07 }
 0x161   : > { %v335_v9 = vmax.f32 %v327_v3, 1.0000001e-07  ;;  %v365_v10 = vmul.f32 1.442695, %v352_v5 }
 0x162   : > { %v329_v11 = vadd.f32 %v320_v63, %v305_v1  ;;  %v359_v12 = vmul.f32 1.442695, %v349_v32  ;;  %v702_v6 = vmin.f32 %v338_v27, 16.118095 }
 0x163   : > { %v704_v7 = vmin.f32 %v335_v9, 16.118095  ;;  %558 = vpow2.f32 %v365_v10 }
 0x164   : > { %v337_v13 = vmax.f32 %v329_v11, 1.0000001e-07  ;;  %v553_v14 = vpop.eup %552  ;;  %560 = vpow2.f32 %v359_v12  ;;  %v354_v15 = vsub.f32 0.0, %v702_v6 }
 0x165   : > { %v351_v38 = vsub.f32 0.0, %v704_v7  ;;  %v371_v8 = vsub.f32 1.0, %v553_v14  ;;  %vm395_vm8 = vcmp.gt.f32.partialorder %v553_v14, 0.5 }
 0x166   : > { %v708_v16 = vmin.f32 %v337_v13, 16.118095  ;;  %v369_v19 = vmul.f32 1.442695, %v354_v15 }
 0x167   : > { %v363_v22 = vmul.f32 1.442695, %v351_v38  ;;  %v379_v23 = vmul.f32 %v371_v8, %v371_v8 }
 0x168   : > { %v353_v24 = vsub.f32 0.0, %v708_v16  ;;  %562 = vpow2.f32 %v369_v19 }
 0x169   : > { %v555_v26 = vpop.eup %554  ;;  %v387_v28 = vmul.f32 4.0, %v379_v23  ;;  %564 = vpow2.f32 %v363_v22 }
 0x16a   : > { %v367_v29 = vmul.f32 1.442695, %v353_v24  ;;  %v557_v30 = vpop.eup %556  ;;  %v372_v18 = vsub.f32 1.0, %v555_v26  ;;  %vm396_vm10 = vcmp.gt.f32.partialorder %v555_v26, 0.5 }
 0x16b   : > { %v403_v33 = vsel %vm395_vm8, %v387_v28, 1.0  ;;  %v374_v34 = vsub.f32 1.0, %v557_v30  ;;  %vm398_vm11 = vcmp.gt.f32.partialorder %v557_v30, 0.5 }
 0x16c   : > { %566 = vpow2.f32 %v367_v29  ;;  %v411_v35 = vmul.f32 %v403_v33, %v682_v31  ;;  %v380_v36 = vmul.f32 %v372_v18, %v372_v18 }
 0x16d   : > { %v559_v37 = vpop.eup %558  ;;  %v382_v39 = vmul.f32 %v374_v34, %v374_v34 }
 0x16e   : > { %v561_v40 = vpop.eup %560  ;;  %420 = vst.msk [vmem:[%s715_s21] sm:$0xff] %vm419_vm9, %v411_v35  ;;  %v388_v41 = vmul.f32 4.0, %v380_v36  ;;  %v376_v42 = vsub.f32 1.0, %v559_v37  ;;  %vm400_vm12 = vcmp.gt.f32.partialorder %v559_v37, 0.5 }
 0x16f   : > { %v390_v43 = vmul.f32 4.0, %v382_v39  ;;  %v373_v21 = vsub.f32 1.0, %v561_v40  ;;  %vm397_vm13 = vcmp.gt.f32.partialorder %v561_v40, 0.5 }
 0x170   : > { %v404_v44 = vsel %vm396_vm10, %v388_v41, 1.0  ;;  %v384_v20 = vmul.f32 %v376_v42, %v376_v42 }
 0x171   : > { %v412_v45 = vmul.f32 %v404_v44, %v687_v46  ;;  %v406_v48 = vsel %vm398_vm11, %v390_v43, 1.0  ;;  %v381_v31 = vmul.f32 %v373_v21, %v373_v21 }
 0x172   : > { %v563_v49 = vpop.eup %562  ;;  %v414_v50 = vmul.f32 %v406_v48, %v689_v47  ;;  %v392_v51 = vmul.f32 4.0, %v384_v20 }
 0x173   : > { %v565_v52 = vpop.eup %564  ;;  %421 = vst.msk [vmem:[%s715_s21 + $0x8] sm:$0xff] %vm419_vm9, %v412_v45  ;;  %v389_v53 = vmul.f32 4.0, %v381_v31  ;;  %v378_v54 = vsub.f32 1.0, %v563_v49  ;;  %vm402_vm14 = vcmp.gt.f32.partialorder %v563_v49, 0.5 }
 0x174   : > { %423 = vst.msk [vmem:[%s715_s21 + $0x18] sm:$0xff] %vm419_vm9, %v414_v50  ;;  %v408_v55 = vsel %vm400_vm12, %v392_v51, 1.0  ;;  %v375_v25 = vsub.f32 1.0, %v565_v52  ;;  %vm399_vm15 = vcmp.gt.f32.partialorder %v565_v52, 0.5 }
 0x175   : > { %v416_v56 = vmul.f32 %v408_v55, %v695_v62  ;;  %v405_v57 = vsel %vm397_vm13, %v389_v53, 1.0  ;;  %v386_v17 = vmul.f32 %v378_v54, %v378_v54 }
 0x176   : > { %v567_v46 = vpop.eup %566  ;;  %v413_v47 = vmul.f32 %v405_v57, %v697_v0  ;;  %v383_v58 = vmul.f32 %v375_v25, %v375_v25 }
 0x177   : > { %v377_v59 = vsub.f32 1.0, %v567_v46  ;;  %425 = vst.msk [vmem:[%s715_s21 + $0x28] sm:$0xff] %vm419_vm9, %v416_v56  ;;  %v394_v60 = vmul.f32 4.0, %v386_v17  ;;  %vm401_vm0 = vcmp.gt.f32.partialorder %v567_v46, 0.5 }
 0x178   : > { %422 = vst.msk [vmem:[%s715_s21 + $0x10] sm:$0xff] %vm419_vm9, %v413_v47  ;;  %v391_v61 = vmul.f32 4.0, %v383_v58 }
 0x179   : > { %v385_v63 = vmul.f32 %v377_v59, %v377_v59  ;;  %v410_v2 = vsel %vm402_vm14, %v394_v60, 1.0 }
 0x17a   : > { %v418_v62 = vmul.f32 %v410_v2, %v702_v6  ;;  %v407_v3 = vsel %vm399_vm15, %v391_v61, 1.0 }
 0x17b   : > { %v393_v4 = vmul.f32 4.0, %v385_v63  ;;  %v415_v0 = vmul.f32 %v407_v3, %v704_v7 }
 0x17c   : > { %427 = vst.msk [vmem:[%s715_s21 + $0x38] sm:$0xff] %vm419_vm9, %v418_v62 }
 0x17d   : > { %v409_v5 = vsel %vm401_vm0, %v393_v4, 1.0  ;;  %424 = vst.msk [vmem:[%s715_s21 + $0x20] sm:$0xff] %vm419_vm9, %v415_v0 }
 0x17e   : > { %v417_v1 = vmul.f32 %v409_v5, %v708_v16 }
 0x180   : > { %426 = vst.msk [vmem:[%s715_s21 + $0x30] sm:$0xff] %vm419_vm9, %v417_v1 }
 0x181 PF: > { %s12_s9 = sadd.s32 1, %s574_s9  }
 0x182   : > { %p9_p4 = scmp.ge.s32.totalorder %s12_s9, 4  }
 0x184   :  { %11 = sbr.rel (!%p9_p4) target bundleno = 1 (0x1), region = 61 }

</bundles_post_ra>
